<compile_context>
chip_gen: v7x
topology: tpu7x:2x2x1
jax: 0.10.0
libtpu: 0.0.40
codegen_flags: <defaults>
</compile_context>

<pallas_src>
import functools

import numpy as np
import jax
import jax.numpy as jnp
from jax.experimental import pallas as pl
from jax.experimental.pallas import tpu as pltpu


# ----------------------------------------------------------------------------
# Host-side (deterministic numpy) construction of the small separable operators
# ----------------------------------------------------------------------------
def _adaptive_pool_matrix(n, o):
    """(o, n) row-stochastic matrix implementing 1D adaptive average pooling."""
    P = np.zeros((o, n), dtype=np.float32)
    for i in range(o):
        start = (i * n) // o
        end = -((-(i + 1) * n) // o)  # ceil((i+1)*n/o)
        P[i, start:end] = 1.0 / (end - start)
    return P


def _bilinear_upsample_matrix(n, o):
    """(n, o) matrix implementing 1D bilinear upsample o -> n, align_corners=True."""
    U = np.zeros((n, o), dtype=np.float32)
    if o == 1:
        U[:, 0] = 1.0
        return U
    if n == 1:              # guard n-1 == 0 (PyTorch picks source index 0)
        U[0, 0] = 1.0
        return U
    for i in range(n):
        src = i * (o - 1) / (n - 1)
        left = min(int(np.floor(src)), o - 2)
        frac = src - left
        U[i, left] = 1.0 - frac
        U[i, left + 1] = frac
    return U


@functools.lru_cache(maxsize=None)
def _build_prefix_operators(H, W, pyramids):
    """Separable prefix-product operators.

    After loop iteration k of the PyTorch module the running x equals
    P_k @ X @ Q_k^T with P_k = A_k ... A_1 (H,H) and Q_k = B_k ... B_1 (W,W),
    hence feat = X + sum_k P_k X Q_k^T.
    Returns (Pstack (K,H,H), QTstack (K,W,W)) float32, QT_k = Q_k^T.
    """
    Ps, QTs = [], []
    P = np.eye(H, dtype=np.float32)
    Q = np.eye(W, dtype=np.float32)
    for b in pyramids:
        A = _bilinear_upsample_matrix(H, b) @ _adaptive_pool_matrix(H, b)  # (H,H)
        B = _bilinear_upsample_matrix(W, b) @ _adaptive_pool_matrix(W, b)  # (W,W)
        P = A @ P
        Q = B @ Q
        Ps.append(P.astype(np.float32))
        QTs.append(np.ascontiguousarray(Q.T, dtype=np.float32))
    return np.stack(Ps), np.stack(QTs)   # small: K*(H^2+W^2) floats


# ----------------------------------------------------------------------------
# Pallas kernel
# ----------------------------------------------------------------------------
def _ppm_kernel(num_bins, x_ref, p_ref, qT_ref, o_ref):
    # x_ref: (TB, H, W) block of rows, p_ref: (K, H, H), qT_ref: (K, W, W)
    TB, H, W = x_ref.shape
    x = x_ref[...]
    acc = x  # identity term of  feat = X + sum_k P_k X Q_k^T

    for k in range(num_bins):  # K is small & static -> fully unrolled
        # W contraction:  t[n,h,v] = sum_w x[n,h,w] * Q_k^T[w,v]
        qT = jnp.broadcast_to(qT_ref[k], (TB, W, W))
        t = jnp.einsum('nhw,nwv->nhv', x, qT,
                       preferred_element_type=jnp.float32)
        # H contraction:  term[n,h,w] = sum_p P_k[h,p] * t[n,p,w]
        p = jnp.broadcast_to(p_ref[k], (TB, H, H))
        acc = acc + jnp.einsum('nhp,npw->nhw', p, t,
                               preferred_element_type=jnp.float32)

    o_ref[...] = acc.astype(o_ref.dtype)


# ----------------------------------------------------------------------------
# Wrapper
# ----------------------------------------------------------------------------
def pyramid_pooling_module(x, pyramids=(1, 2, 3, 6), block_rows=None):
    """PyramidPoolingModule forward. x: (N, C, H, W)."""
    N, C, H, W = x.shape
    K = len(pyramids)
    P_np, QT_np = _build_prefix_operators(H, W, tuple(pyramids))
    Pstack = jnp.asarray(P_np)    # (K, H, H)
    QTstack = jnp.asarray(QT_np)  # (K, W, W)

    NC = N * C
    x3 = x.reshape(NC, H, W).astype(jnp.float32)

    # Row-block size: keep (in + out) double-buffered blocks within ~4 MiB of
    # VMEM (lanes pad W up to 128) so the same tiling fits v5e/v6e (32 MiB
    # scoped default) and v7x (64 MiB physical).
    if block_rows is None:
        bytes_per_row = H * max(W, 128) * 4
        block_rows = max(8, min(256, (2 * 1024 * 1024) // max(bytes_per_row, 1)))
    TB = int(min(block_rows, NC))
    NC_pad = pl.cdiv(NC, TB) * TB
    if NC_pad != NC:
        x3 = jnp.pad(x3, ((0, NC_pad - NC), (0, 0), (0, 0)))

    out = pl.pallas_call(
        functools.partial(_ppm_kernel, K),
        out_shape=jax.ShapeDtypeStruct((NC_pad, H, W), jnp.float32),
        grid=(NC_pad // TB,),
        in_specs=[
            pl.BlockSpec((TB, H, W), lambda i: (i, 0, 0)),   # pipelined rows
            pl.BlockSpec((K, H, H), lambda i: (0, 0, 0)),    # resident operators
            pl.BlockSpec((K, W, W), lambda i: (0, 0, 0)),    # resident operators
        ],
        out_specs=pl.BlockSpec((TB, H, W), lambda i: (i, 0, 0)),
        compiler_params=pltpu.CompilerParams(
            dimension_semantics=("parallel",)),
    )(x3, Pstack, QTstack)

    out = out[:NC].reshape(N, C, H, W)
    return out.astype(x.dtype)


# ----------------------------------------------------------------------------
# Plain-JAX reference (sequential, mirrors the PyTorch loop exactly)
# ----------------------------------------------------------------------------
def _reference_jax(x, pyramids=(1, 2, 3, 6)):
    N, C, H, W = x.shape
    feat = x.astype(jnp.float32)
    cur = feat
    for b in pyramids:
        A = jnp.asarray(_bilinear_upsample_matrix(H, b) @ _adaptive_pool_matrix(H, b))
        B = jnp.asarray(_bilinear_upsample_matrix(W, b) @ _adaptive_pool_matrix(W, b))
        cur = jnp.einsum('hp,ncpq,wq->nchw', A, cur, B)
        feat = feat + cur
    return feat


if __name__ == "__main__":
    key = jax.random.PRNGKey(0)
    N, C, H, W = 2, 4, 16, 16
    x = jax.random.normal(key, (N, C, H, W), dtype=jnp.float32)

    out = pyramid_pooling_module(x, pyramids=(1, 2, 3, 6))
    out = jax.block_until_ready(out)

    # Check 1: against a plain-JAX implementation of the same module semantics.
    ref = _reference_jax(x, pyramids=(1, 2, 3, 6))
    assert jnp.allclose(out, ref, atol=1e-4, rtol=1e-4), "mismatch vs JAX reference"

    # Check 2: analytic — with the first bin == 1 the module degenerates to
    # x + len(pyramids) * mean(x over H, W).
    analytic = x + 4.0 * jnp.mean(x, axis=(2, 3), keepdims=True)
    assert jnp.allclose(out, analytic, atol=1e-3, rtol=1e-3), "mismatch vs analytic"

    print("KERNEL_OK")
</pallas_src>

<mosaic_0001>
module attributes {stable_mosaic.version = 11 : i64} {
  func.func @_ppm_kernel(%arg0: i32, %arg1: memref<8x16x16xf32, #tpu.memory_space<vmem>>, %arg2: memref<4x16x16xf32, #tpu.memory_space<vmem>>, %arg3: memref<4x16x16xf32, #tpu.memory_space<vmem>>, %arg4: memref<8x16x16xf32, #tpu.memory_space<vmem>>) attributes {dimension_semantics = [#tpu.dimension_semantics<parallel>], iteration_bounds = array<i64: 1>, scalar_prefetch = 0 : i64, scratch_operands = 0 : i64, tpu.core_type = #tpu.core_type<tc>, window_params = [{transform_indices = @transform_0, window_bounds = array<i64: 8, 16, 16>}, {pipeline_mode = #tpu.pipeline_mode<synchronous>, transform_indices = @transform_1, window_bounds = array<i64: 4, 16, 16>}, {pipeline_mode = #tpu.pipeline_mode<synchronous>, transform_indices = @transform_2, window_bounds = array<i64: 4, 16, 16>}, {transform_indices = @transform_3, window_bounds = array<i64: 8, 16, 16>}]} {
    %c0 = arith.constant 0 : index
    %c0_0 = arith.constant 0 : index
    %c0_1 = arith.constant 0 : index
    %0 = vector.load %arg1[%c0, %c0_0, %c0_1] : memref<8x16x16xf32, #tpu.memory_space<vmem>>, vector<8x16x16xf32>
    %c0_2 = arith.constant 0 : index
    %c0_3 = arith.constant 0 : index
    %c0_4 = arith.constant 0 : index
    %1 = vector.load %arg3[%c0_2, %c0_3, %c0_4] : memref<4x16x16xf32, #tpu.memory_space<vmem>>, vector<1x16x16xf32>
    %2 = vector.shape_cast %1 : vector<1x16x16xf32> to vector<16x16xf32>
    %3 = vector.shape_cast %2 : vector<16x16xf32> to vector<1x16x16xf32>
    %4 = vector.broadcast %3 : vector<1x16x16xf32> to vector<8x16x16xf32>
    "tpu.trace_start"() <{level = 10 : i32, message = "nhw,nwv->nhv"}> : () -> ()
    %cst = arith.constant dense<0.000000e+00> : vector<8x16x16xf32>
    %5 = tpu.matmul %0, %4, %cst {dimension_numbers = #tpu.dot_dimension_numbers<[2], [1], [1], [2], [0, 0, 0, 1, 1, 2], [0], [0]>} : vector<8x16x16xf32>, vector<8x16x16xf32>, vector<8x16x16xf32> -> vector<8x16x16xf32>
    "tpu.trace_stop"() : () -> ()
    %c0_5 = arith.constant 0 : index
    %c0_6 = arith.constant 0 : index
    %c0_7 = arith.constant 0 : index
    %6 = vector.load %arg2[%c0_5, %c0_6, %c0_7] : memref<4x16x16xf32, #tpu.memory_space<vmem>>, vector<1x16x16xf32>
    %7 = vector.shape_cast %6 : vector<1x16x16xf32> to vector<16x16xf32>
    %8 = vector.shape_cast %7 : vector<16x16xf32> to vector<1x16x16xf32>
    %9 = vector.broadcast %8 : vector<1x16x16xf32> to vector<8x16x16xf32>
    "tpu.trace_start"() <{level = 10 : i32, message = "nhp,npw->nhw"}> : () -> ()
    %cst_8 = arith.constant dense<0.000000e+00> : vector<8x16x16xf32>
    %10 = tpu.matmul %9, %5, %cst_8 {dimension_numbers = #tpu.dot_dimension_numbers<[2], [1], [1], [2], [0, 0, 0, 1, 1, 2], [0], [0]>} : vector<8x16x16xf32>, vector<8x16x16xf32>, vector<8x16x16xf32> -> vector<8x16x16xf32>
    "tpu.trace_stop"() : () -> ()
    %11 = arith.addf %0, %10 : vector<8x16x16xf32>
    %c1 = arith.constant 1 : index
    %c0_9 = arith.constant 0 : index
    %c0_10 = arith.constant 0 : index
    %12 = vector.load %arg3[%c1, %c0_9, %c0_10] : memref<4x16x16xf32, #tpu.memory_space<vmem>>, vector<1x16x16xf32>
    %13 = vector.shape_cast %12 : vector<1x16x16xf32> to vector<16x16xf32>
    %14 = vector.shape_cast %13 : vector<16x16xf32> to vector<1x16x16xf32>
    %15 = vector.broadcast %14 : vector<1x16x16xf32> to vector<8x16x16xf32>
    "tpu.trace_start"() <{level = 10 : i32, message = "nhw,nwv->nhv"}> : () -> ()
    %cst_11 = arith.constant dense<0.000000e+00> : vector<8x16x16xf32>
    %16 = tpu.matmul %0, %15, %cst_11 {dimension_numbers = #tpu.dot_dimension_numbers<[2], [1], [1], [2], [0, 0, 0, 1, 1, 2], [0], [0]>} : vector<8x16x16xf32>, vector<8x16x16xf32>, vector<8x16x16xf32> -> vector<8x16x16xf32>
    "tpu.trace_stop"() : () -> ()
    %c1_12 = arith.constant 1 : index
    %c0_13 = arith.constant 0 : index
    %c0_14 = arith.constant 0 : index
    %17 = vector.load %arg2[%c1_12, %c0_13, %c0_14] : memref<4x16x16xf32, #tpu.memory_space<vmem>>, vector<1x16x16xf32>
    %18 = vector.shape_cast %17 : vector<1x16x16xf32> to vector<16x16xf32>
    %19 = vector.shape_cast %18 : vector<16x16xf32> to vector<1x16x16xf32>
    %20 = vector.broadcast %19 : vector<1x16x16xf32> to vector<8x16x16xf32>
    "tpu.trace_start"() <{level = 10 : i32, message = "nhp,npw->nhw"}> : () -> ()
    %cst_15 = arith.constant dense<0.000000e+00> : vector<8x16x16xf32>
    %21 = tpu.matmul %20, %16, %cst_15 {dimension_numbers = #tpu.dot_dimension_numbers<[2], [1], [1], [2], [0, 0, 0, 1, 1, 2], [0], [0]>} : vector<8x16x16xf32>, vector<8x16x16xf32>, vector<8x16x16xf32> -> vector<8x16x16xf32>
    "tpu.trace_stop"() : () -> ()
    %22 = arith.addf %11, %21 : vector<8x16x16xf32>
    %c2 = arith.constant 2 : index
    %c0_16 = arith.constant 0 : index
    %c0_17 = arith.constant 0 : index
    %23 = vector.load %arg3[%c2, %c0_16, %c0_17] : memref<4x16x16xf32, #tpu.memory_space<vmem>>, vector<1x16x16xf32>
    %24 = vector.shape_cast %23 : vector<1x16x16xf32> to vector<16x16xf32>
    %25 = vector.shape_cast %24 : vector<16x16xf32> to vector<1x16x16xf32>
    %26 = vector.broadcast %25 : vector<1x16x16xf32> to vector<8x16x16xf32>
    "tpu.trace_start"() <{level = 10 : i32, message = "nhw,nwv->nhv"}> : () -> ()
    %cst_18 = arith.constant dense<0.000000e+00> : vector<8x16x16xf32>
    %27 = tpu.matmul %0, %26, %cst_18 {dimension_numbers = #tpu.dot_dimension_numbers<[2], [1], [1], [2], [0, 0, 0, 1, 1, 2], [0], [0]>} : vector<8x16x16xf32>, vector<8x16x16xf32>, vector<8x16x16xf32> -> vector<8x16x16xf32>
    "tpu.trace_stop"() : () -> ()
    %c2_19 = arith.constant 2 : index
    %c0_20 = arith.constant 0 : index
    %c0_21 = arith.constant 0 : index
    %28 = vector.load %arg2[%c2_19, %c0_20, %c0_21] : memref<4x16x16xf32, #tpu.memory_space<vmem>>, vector<1x16x16xf32>
    %29 = vector.shape_cast %28 : vector<1x16x16xf32> to vector<16x16xf32>
    %30 = vector.shape_cast %29 : vector<16x16xf32> to vector<1x16x16xf32>
    %31 = vector.broadcast %30 : vector<1x16x16xf32> to vector<8x16x16xf32>
    "tpu.trace_start"() <{level = 10 : i32, message = "nhp,npw->nhw"}> : () -> ()
    %cst_22 = arith.constant dense<0.000000e+00> : vector<8x16x16xf32>
    %32 = tpu.matmul %31, %27, %cst_22 {dimension_numbers = #tpu.dot_dimension_numbers<[2], [1], [1], [2], [0, 0, 0, 1, 1, 2], [0], [0]>} : vector<8x16x16xf32>, vector<8x16x16xf32>, vector<8x16x16xf32> -> vector<8x16x16xf32>
    "tpu.trace_stop"() : () -> ()
    %33 = arith.addf %22, %32 : vector<8x16x16xf32>
    %c3 = arith.constant 3 : index
    %c0_23 = arith.constant 0 : index
    %c0_24 = arith.constant 0 : index
    %34 = vector.load %arg3[%c3, %c0_23, %c0_24] : memref<4x16x16xf32, #tpu.memory_space<vmem>>, vector<1x16x16xf32>
    %35 = vector.shape_cast %34 : vector<1x16x16xf32> to vector<16x16xf32>
    %36 = vector.shape_cast %35 : vector<16x16xf32> to vector<1x16x16xf32>
    %37 = vector.broadcast %36 : vector<1x16x16xf32> to vector<8x16x16xf32>
    "tpu.trace_start"() <{level = 10 : i32, message = "nhw,nwv->nhv"}> : () -> ()
    %cst_25 = arith.constant dense<0.000000e+00> : vector<8x16x16xf32>
    %38 = tpu.matmul %0, %37, %cst_25 {dimension_numbers = #tpu.dot_dimension_numbers<[2], [1], [1], [2], [0, 0, 0, 1, 1, 2], [0], [0]>} : vector<8x16x16xf32>, vector<8x16x16xf32>, vector<8x16x16xf32> -> vector<8x16x16xf32>
    "tpu.trace_stop"() : () -> ()
    %c3_26 = arith.constant 3 : index
    %c0_27 = arith.constant 0 : index
    %c0_28 = arith.constant 0 : index
    %39 = vector.load %arg2[%c3_26, %c0_27, %c0_28] : memref<4x16x16xf32, #tpu.memory_space<vmem>>, vector<1x16x16xf32>
    %40 = vector.shape_cast %39 : vector<1x16x16xf32> to vector<16x16xf32>
    %41 = vector.shape_cast %40 : vector<16x16xf32> to vector<1x16x16xf32>
    %42 = vector.broadcast %41 : vector<1x16x16xf32> to vector<8x16x16xf32>
    "tpu.trace_start"() <{level = 10 : i32, message = "nhp,npw->nhw"}> : () -> ()
    %cst_29 = arith.constant dense<0.000000e+00> : vector<8x16x16xf32>
    %43 = tpu.matmul %42, %38, %cst_29 {dimension_numbers = #tpu.dot_dimension_numbers<[2], [1], [1], [2], [0, 0, 0, 1, 1, 2], [0], [0]>} : vector<8x16x16xf32>, vector<8x16x16xf32>, vector<8x16x16xf32> -> vector<8x16x16xf32>
    "tpu.trace_stop"() : () -> ()
    %44 = arith.addf %33, %43 : vector<8x16x16xf32>
    %c0_30 = arith.constant 0 : index
    %c0_31 = arith.constant 0 : index
    %c0_32 = arith.constant 0 : index
    %45 = vector.load %arg4[%c0_30, %c0_31, %c0_32] : memref<8x16x16xf32, #tpu.memory_space<vmem>>, vector<8x16x16xf32>
    tpu.vector_store %arg4[%c0_30, %c0_31, %c0_32], %44 {strides = array<i32>} : memref<8x16x16xf32, #tpu.memory_space<vmem>>, vector<8x16x16xf32>,
    return
  }
  func.func @transform_0(%arg0: i32) -> (i32, i32, i32) {
    %c0_i32 = arith.constant 0 : i32
    %c0_i32_0 = arith.constant 0 : i32
    %c0_i32_1 = arith.constant 0 : i32
    return %arg0, %c0_i32, %c0_i32_0 : i32, i32, i32
  }
  func.func @transform_1(%arg0: i32) -> (i32, i32, i32) {
    %c0_i32 = arith.constant 0 : i32
    %c0_i32_0 = arith.constant 0 : i32
    %c0_i32_1 = arith.constant 0 : i32
    %c0_i32_2 = arith.constant 0 : i32
    return %c0_i32, %c0_i32_0, %c0_i32_1 : i32, i32, i32
  }
  func.func @transform_2(%arg0: i32) -> (i32, i32, i32) {
    %c0_i32 = arith.constant 0 : i32
    %c0_i32_0 = arith.constant 0 : i32
    %c0_i32_1 = arith.constant 0 : i32
    %c0_i32_2 = arith.constant 0 : i32
    return %c0_i32, %c0_i32_0, %c0_i32_1 : i32, i32, i32
  }
  func.func @transform_3(%arg0: i32) -> (i32, i32, i32) {
    %c0_i32 = arith.constant 0 : i32
    %c0_i32_0 = arith.constant 0 : i32
    %c0_i32_1 = arith.constant 0 : i32
    return %arg0, %c0_i32, %c0_i32_0 : i32, i32, i32
  }
}

</mosaic_0001>

<bundles_post_ra>
// kernel: tpu_custom_call.1
= control target key start
LH: loop header
LB: loop body
LE: loop exit
PB: predicated region body
PF: predicated region fallthrough
CT: control target
= control target key end

     0   :  { %8 = vsyncpa [#allocation3], 0  ;;  %s6666_s0 = inlined_call_operand.hbm [shape: f32[8,16,16], index: 0, kind: input, shape index: {}]   ;;  %s6667_s1 = inlined_call_operand.hbm [shape: f32[4,16,16], index: 1, kind: input, shape index: {}]   ;;  %s6668_s2 = inlined_call_operand.hbm [shape: f32[4,16,16], index: 2, kind: input, shape index: {}]   ;;  %s6669_s3 = inlined_call_operand.hbm [shape: f32[8,16,16], index: 3, kind: output, shape index: {}]  }
   0x1   :  { %9 = vsyncpa [#allocation6], 0 }
   0x2   :  { %10 = vsyncpa [#allocation4], 0  ;;  %s6317_s12 = smov [#allocation5]   ;;  %s6318_s14 = smov [#allocation2]  }
   0x3   :  { %s28_s13 = sshll.u32 %s6317_s12, 4  ;;  %s16_s15 = sshll.u32 %s6318_s14, 4  ;;  %s29_s13 = int_to_ptr.vmem [resolvable:$true] %s28_s13  ;;  %s6343_s15 = int_to_ptr.vmem [resolvable:$true] %s16_s15 }
   0x4   :  { %s6223_s18 = scalar_lea.hbm %s6667_s1, 1024 }
   0x5   :  { %p6224_p0 = scmp.ne.s32.totalorder %s6667_s1, %s6223_s18  ;;  %p6227_p1 = scmp.lt.u32.totalorder %s6223_s18, %s6667_s1 }
   0x7   :  { %p6229_p2 = pnand %p6227_p1, %p6224_p0 }
   0x9   :  { %6232 = shalt.err (!%p6229_p2)
}
   0xa   :  { %s6233_s23 = scalar_lea.vmem %s29_s13, 1024  ;;  %p6238_p4 = scmp.lt.s32.totalorder %s29_s13, %s29_s13 }
   0xb   :  { %p6234_p3 = scmp.ne.s32.totalorder %s29_s13, %s6233_s23  ;;  %p6239_p5 = scmp.lt.s32.totalorder %s6233_s23, %s6233_s23 }
   0xd   :  { %p6240_p6 = por %p6239_p5, %p6238_p4 }
   0xf   :  { %p6241_p7 = pnand %p6240_p6, %p6234_p3 }
  0x11   :  { %6244 = shalt.err (!%p6241_p7)
}
  0x12   :  { %s6319_s24 = smov 128   ;;  %s6320_s25 = smov 8  }
  0x13   :  { %34 = dma.hbm_to_vmem [thread:$0]  %s6667_s1, 1024, %s29_s13, [#allocation6], %s6319_s24, %s6319_s24, %s6320_s25  }
  0x14   :  { %s6245_s30 = scalar_lea.hbm %s6666_s0, 2048 }
  0x15   :  { %p6246_p8 = scmp.ne.s32.totalorder %s6666_s0, %s6245_s30  ;;  %p6249_p9 = scmp.lt.u32.totalorder %s6245_s30, %s6666_s0 }
  0x17   :  { %p6251_p10 = pnand %p6249_p9, %p6246_p8 }
  0x19   :  { %6254 = shalt.err (!%p6251_p10)
}
  0x1a   :  { %s6255_s8 = scalar_lea.vmem %s6343_s15, 2048  ;;  %p6260_p12 = scmp.lt.s32.totalorder %s6343_s15, %s6343_s15 }
  0x1b   :  { %p6256_p11 = scmp.ne.s32.totalorder %s6343_s15, %s6255_s8  ;;  %p6261_p13 = scmp.lt.s32.totalorder %s6255_s8, %s6255_s8 }
  0x1d   :  { %p6262_p0 = por %p6261_p13, %p6260_p12 }
  0x1f   :  { %p6263_p1 = pnand %p6262_p0, %p6256_p11 }
  0x21   :  { %6266 = shalt.err (!%p6263_p1)
}
  0x22   :  { %22 = dma.hbm_to_vmem [thread:$0]  %s6666_s0, 2048, %s6343_s15, [#allocation3], %s6319_s24, %s6319_s24, %s6320_s25  }
  0x23   :  { %s6321_s10 = smov [#allocation7]   ;;  %s6267_s14 = scalar_lea.hbm %s6668_s2, 1024 }
  0x24   :  { %s40_s11 = sshll.u32 %s6321_s10, 4  ;;  %p6268_p2 = scmp.ne.s32.totalorder %s6668_s2, %s6267_s14  ;;  %s41_s11 = int_to_ptr.vmem [resolvable:$true] %s40_s11 }
  0x25   :  { %p6271_p3 = scmp.lt.u32.totalorder %s6267_s14, %s6668_s2 }
  0x27   :  { %p6273_p4 = pnand %p6271_p3, %p6268_p2 }
  0x29   :  { %6276 = shalt.err (!%p6273_p4)
}
  0x2a   :  { %s6277_s20 = scalar_lea.vmem %s41_s11, 1024  ;;  %p6282_p6 = scmp.lt.s32.totalorder %s41_s11, %s41_s11 }
  0x2b   :  { %p6278_p5 = scmp.ne.s32.totalorder %s41_s11, %s6277_s20  ;;  %p6283_p7 = scmp.lt.s32.totalorder %s6277_s20, %s6277_s20 }
  0x2d   :  { %p6284_p8 = por %p6283_p7, %p6282_p6 }
  0x2f   :  { %p6285_p9 = pnand %p6284_p8, %p6278_p5 }
  0x31   :  { %6288 = shalt.err (!%p6285_p9)
}
  0x32   :  { %46 = dma.hbm_to_vmem [thread:$0]  %s6668_s2, 1024, %s41_s11, [#allocation6], %s6319_s24, %s6319_s24, %s6320_s25  }
  0x33   :  { %6311 = dma.done.wait [#allocation3], 2048  }
  0x34   :  { %6312 = vsyncadd [#allocation3], 4294965248 }
  0x35   :  { %6313 = dma.done.wait [#allocation6], 2048  }
  0x36   :  { %6314 = vsyncadd [#allocation6], 4294965248  ;;  %vm74_vm0 = vcmask 130048   ;;  %v72_v0 = vld [vmem:[#allocation7] sm:$0xff]  ;;  %v73_v1 = vld [vmem:[#allocation7 + $0x8] sm:$0xff]  ;;  %s6322_s2 = smov [#allocation8]  }
  0x37   :  { %v6395_v2 = vld [vmem:[#allocation2] sm:$0xff]  ;;  %v5897_v3 = vpack.c.bf16 %v73_v1, %v72_v0  ;;  %v6399_v4 = vld [vmem:[#allocation2 + $0x10] sm:$0xff]  ;;  %v6403_v5 = vld [vmem:[#allocation2 + $0x8] sm:$0xff]  ;;  %s5052_s21 = sshll.u32 %s6322_s2, 4  ;;  %s5053_s21 = int_to_ptr.vmem [resolvable:$true] %s5052_s21 }
  0x38   :  { %5453 = vmatprep.mubr.msk.f32.mxu0 %vm74_vm0, %v6395_v2  ;;  %5460 = vmatprep.mubr.msk.f32.mxu1 %vm74_vm0, %v6399_v4  ;;  %v6405_v6 = vld [vmem:[#allocation2 + $0x18] sm:$0xff]  ;;  %v6407_v7 = vld [vmem:[#allocation2 + $0x20] sm:$0xff]  ;;  %v6409_v8 = vld [vmem:[#allocation2 + $0x30] sm:$0xff]  ;;  %s6289_s22 = scalar_lea.vmem %s5053_s21, 2048  ;;  %p6294_p11 = scmp.lt.s32.totalorder %s5053_s21, %s5053_s21 }
  0x39   :  { %5898 = vmatprep.subr.bf16.mxu0 %v5897_v3  ;;  %5902 = vmatprep.subr.bf16.mxu1 %v5897_v3  ;;  %v6415_v9 = vld [vmem:[#allocation2 + $0x28] sm:$0xff]  ;;  %v6417_v10 = vld [vmem:[#allocation2 + $0x38] sm:$0xff]  ;;  %v6423_v11 = vld [vmem:[#allocation2 + $0x40] sm:$0xff]  ;;  %p6290_p10 = scmp.ne.s32.totalorder %s5053_s21, %s6289_s22  ;;  %p6295_p12 = scmp.lt.s32.totalorder %s6289_s22, %s6289_s22 }
  0x3a   :  { %5900 = vmatpush3.bf16.msra.mxu0 %v5897_v3  ;;  %5904 = vmatpush3.bf16.msra.mxu1 %v5897_v3  ;;  %v6425_v12 = vld [vmem:[#allocation2 + $0x50] sm:$0xff]  ;;  %v6431_v13 = vld [vmem:[#allocation2 + $0x48] sm:$0xff]  ;;  %v6433_v14 = vld [vmem:[#allocation2 + $0x58] sm:$0xff] }
  0x3b   :  { %5906 = vmatprep.subr.bf16.mxu0 %v5897_v3  ;;  %5910 = vmatprep.subr.bf16.mxu1 %v5897_v3  ;;  %v6439_v15 = vld [vmem:[#allocation2 + $0x60] sm:$0xff]  ;;  %v6441_v16 = vld [vmem:[#allocation2 + $0x70] sm:$0xff]  ;;  %v6447_v17 = vld [vmem:[#allocation2 + $0x68] sm:$0xff]  ;;  %p6296_p13 = por %p6295_p12, %p6294_p11 }
  0x3c   :  { %v6449_v18 = vld [vmem:[#allocation2 + $0x78] sm:$0xff]  ;;  %v723_v19 = vld [vmem:[#allocation5] sm:$0xff]  ;;  %v724_v30 = vld [vmem:[#allocation5 + $0x8] sm:$0xff] }
  0x3d   :  { %5454 = vmatmul.mubr.msk.f32.vlgmr.msra.gmra.mrb[0].mxu0 %vm74_vm0, %v6403_v5  ;;  %5461 = vmatmul.mubr.msk.f32.vlgmr.msra.gmra.mrb[0].mxu1 %vm74_vm0, %v6405_v6  ;;  %v1348_v43 = vld [vmem:[#allocation7 + $0x10] sm:$0xff]  ;;  %v1349_v44 = vld [vmem:[#allocation7 + $0x18] sm:$0xff]  ;;  %p6297_p0 = pnand %p6296_p13, %p6290_p10 }
  0x3e   :  { %5908 = vmatpush3.bf16.msra.mxu0 %v5897_v3  ;;  %5912 = vmatpush3.bf16.msra.mxu1 %v5897_v3  ;;  %v5961_v47 = vpack.c.bf16 %v1349_v44, %v1348_v43  ;;  %v1951_v48 = vld [vmem:[#allocation5 + $0x10] sm:$0xff]  ;;  %v1952_v59 = vld [vmem:[#allocation5 + $0x18] sm:$0xff] }
  0x3f   :  { %5467 = vmatprep.mubr.msk.f32.mxu0 %vm74_vm0, %v6407_v7  ;;  %5474 = vmatprep.mubr.msk.f32.mxu1 %vm74_vm0, %v6409_v8 }
  0x40   :  { %5914 = vmatprep.subr.bf16.mxu0 %v5897_v3  ;;  %5918 = vmatprep.subr.bf16.mxu1 %v5897_v3 }
  0x41   :  { %5468 = vmatmul.mubr.msk.f32.vlgmr.msra.gmra.mrb[2].mxu0 %vm74_vm0, %v6415_v9  ;;  %5475 = vmatmul.mubr.msk.f32.vlgmr.msra.gmra.mrb[2].mxu1 %vm74_vm0, %v6417_v10 }
  0x42   :  { %5916 = vmatpush3.bf16.msra.mxu0 %v5897_v3  ;;  %5920 = vmatpush3.bf16.msra.mxu1 %v5897_v3 }
  0x43   :  { %5481 = vmatprep.mubr.msk.f32.mxu0 %vm74_vm0, %v6423_v11  ;;  %5488 = vmatprep.mubr.msk.f32.mxu1 %vm74_vm0, %v6425_v12 }
  0x44   :  { %5922 = vmatprep.subr.bf16.mxu0 %v5897_v3  ;;  %5926 = vmatprep.subr.bf16.mxu1 %v5897_v3 }
  0x45   :  { %5482 = vmatmul.mubr.msk.f32.vlgmr.msra.gmra.mrb[4].mxu0 %vm74_vm0, %v6431_v13  ;;  %5489 = vmatmul.mubr.msk.f32.vlgmr.msra.gmra.mrb[4].mxu1 %vm74_vm0, %v6433_v14 }
  0x46   :  { %5924 = vmatpush3.bf16.msra.mxu0 %v5897_v3  ;;  %5928 = vmatpush3.bf16.msra.mxu1 %v5897_v3 }
  0x47   :  { %5495 = vmatprep.mubr.msk.f32.mxu0 %vm74_vm0, %v6439_v15  ;;  %5502 = vmatprep.mubr.msk.f32.mxu1 %vm74_vm0, %v6441_v16 }
  0x49   :  { %5496 = vmatmul.mubr.msk.f32.vlgmr.msra.gmra.mrb[6].mxu0 %vm74_vm0, %v6447_v17  ;;  %5503 = vmatmul.mubr.msk.f32.vlgmr.msra.gmra.mrb[6].mxu1 %vm74_vm0, %v6449_v18 }
  0x4a   :  { %5509 = vmatprep.mubr.msk.f32.mxu0 %vm74_vm0, %v723_v19  ;;  %5516 = vmatprep.mubr.msk.f32.mxu1 %vm74_vm0, %v723_v19 }
 0x110   :  { %v5455_v20 = vpop.f32.mrb[0].mxu0  ;;  %v5462_v21 = vpop.f32.mrb[0].mxu1 }
 0x111   :  { %v147_v22 = vpop.f32.mrb[1].mxu0  ;;  %v228_v23 = vpop.f32.mrb[1].mxu1 }
 0x112   :  { %v5929_v24 = vpack.c.bf16 %v5455_v20, %v147_v22  ;;  %v5933_v25 = vpack.c.bf16 %v5462_v21, %v228_v23 }
 0x114   :  { %v5469_v26 = vpop.f32.mrb[2].mxu0  ;;  %v5476_v27 = vpop.f32.mrb[2].mxu1  ;;  %5930 = vmatprep.subr.bf16.mxu0 %v5929_v24  ;;  %5934 = vmatprep.subr.bf16.mxu1 %v5933_v25 }
 0x115   :  { %v309_v28 = vpop.f32.mrb[3].mxu0  ;;  %v390_v29 = vpop.f32.mrb[3].mxu1  ;;  %5932 = vmatpush3.bf16.msra.mxu0 %v5929_v24  ;;  %5936 = vmatpush3.bf16.msra.mxu1 %v5933_v25  ;;  %v2576_v24 = vld [vmem:[#allocation7 + $0x20] sm:$0xff]  ;;  %v2577_v25 = vld [vmem:[#allocation7 + $0x28] sm:$0xff] }
 0x116   :  { %v5937_v31 = vpack.c.bf16 %v5469_v26, %v309_v28  ;;  %v5941_v32 = vpack.c.bf16 %v5476_v27, %v390_v29  ;;  %v6025_v28 = vpack.c.bf16 %v2577_v25, %v2576_v24  ;;  %v3179_v29 = vld [vmem:[#allocation5 + $0x20] sm:$0xff] }
 0x118   :  { %v5483_v33 = vpop.f32.mrb[4].mxu0  ;;  %v5490_v34 = vpop.f32.mrb[4].mxu1  ;;  %5510 = vmatmul.mubr.msk.f32.vlgmr.msra.gmra.mrb[8].mxu0 %vm74_vm0, %v724_v30  ;;  %5517 = vmatmul.mubr.msk.f32.vlgmr.msra.gmra.mrb[8].mxu1 %vm74_vm0, %v724_v30 }
 0x119   :  { %5938 = vmatprep.subr.bf16.mxu0 %v5937_v31  ;;  %5942 = vmatprep.subr.bf16.mxu1 %v5941_v32  ;;  %v471_v35 = vpop.f32.mrb[5].mxu0  ;;  %v552_v36 = vpop.f32.mrb[5].mxu1 }
 0x11a   :  { %v5945_v37 = vpack.c.bf16 %v5483_v33, %v471_v35  ;;  %v5949_v38 = vpack.c.bf16 %v5490_v34, %v552_v36  ;;  %5940 = vmatpush3.bf16.msra.mxu0 %v5937_v31  ;;  %5944 = vmatpush3.bf16.msra.mxu1 %v5941_v32 }
 0x11b   :  { %5523 = vmatprep.mubr.msk.f32.mxu0 %vm74_vm0, %v723_v19  ;;  %5530 = vmatprep.mubr.msk.f32.mxu1 %vm74_vm0, %v723_v19 }
 0x11c   :  { %v5497_v39 = vpop.f32.mrb[6].mxu0  ;;  %v5504_v40 = vpop.f32.mrb[6].mxu1  ;;  %5946 = vmatprep.subr.bf16.mxu0 %v5945_v37  ;;  %5950 = vmatprep.subr.bf16.mxu1 %v5949_v38 }
 0x11d   :  { %5524 = vmatmul.mubr.msk.f32.vlgmr.msra.gmra.mrb[10].mxu0 %vm74_vm0, %v724_v30  ;;  %5531 = vmatmul.mubr.msk.f32.vlgmr.msra.gmra.mrb[10].mxu1 %vm74_vm0, %v724_v30  ;;  %v633_v41 = vpop.f32.mrb[7].mxu0  ;;  %v714_v42 = vpop.f32.mrb[7].mxu1 }
 0x11e   :  { %v5953_v45 = vpack.c.bf16 %v5497_v39, %v633_v41  ;;  %v5957_v46 = vpack.c.bf16 %v5504_v40, %v714_v42  ;;  %5948 = vmatpush3.bf16.msra.mxu0 %v5945_v37  ;;  %5952 = vmatpush3.bf16.msra.mxu1 %v5949_v38  ;;  %v3180_v40 = vld [vmem:[#allocation5 + $0x28] sm:$0xff] }
 0x11f   :  { %5537 = vmatprep.mubr.msk.f32.mxu0 %vm74_vm0, %v723_v19  ;;  %5544 = vmatprep.mubr.msk.f32.mxu1 %vm74_vm0, %v723_v19 }
 0x120   :  { %5954 = vmatprep.subr.bf16.mxu0 %v5953_v45  ;;  %5958 = vmatprep.subr.bf16.mxu1 %v5957_v46 }
 0x121   :  { %5538 = vmatmul.mubr.msk.f32.vlgmr.msra.gmra.mrb[12].mxu0 %vm74_vm0, %v724_v30  ;;  %5545 = vmatmul.mubr.msk.f32.vlgmr.msra.gmra.mrb[12].mxu1 %vm74_vm0, %v724_v30 }
 0x122   :  { %5956 = vmatpush3.bf16.msra.mxu0 %v5953_v45  ;;  %5960 = vmatpush3.bf16.msra.mxu1 %v5957_v46 }
 0x123   :  { %5551 = vmatprep.mubr.msk.f32.mxu0 %vm74_vm0, %v723_v19  ;;  %5558 = vmatprep.mubr.msk.f32.mxu1 %vm74_vm0, %v723_v19 }
 0x124   :  { %5962 = vmatprep.subr.bf16.mxu0 %v5961_v47  ;;  %5966 = vmatprep.subr.bf16.mxu1 %v5961_v47 }
 0x125   :  { %5552 = vmatmul.mubr.msk.f32.vlgmr.msra.gmra.mrb[14].mxu0 %vm74_vm0, %v724_v30  ;;  %5559 = vmatmul.mubr.msk.f32.vlgmr.msra.gmra.mrb[14].mxu1 %vm74_vm0, %v724_v30 }
 0x126   :  { %5964 = vmatpush3.bf16.msra.mxu0 %v5961_v47  ;;  %5968 = vmatpush3.bf16.msra.mxu1 %v5961_v47 }
 0x127   :  { %5565 = vmatprep.mubr.msk.f32.mxu0 %vm74_vm0, %v6395_v2  ;;  %5572 = vmatprep.mubr.msk.f32.mxu1 %vm74_vm0, %v6399_v4 }
 0x128   :  { %5970 = vmatprep.subr.bf16.mxu0 %v5961_v47  ;;  %5974 = vmatprep.subr.bf16.mxu1 %v5961_v47 }
 0x129   :  { %5566 = vmatmul.mubr.msk.f32.vlgmr.msra.gmra.mrb[16].mxu0 %vm74_vm0, %v6403_v5  ;;  %5573 = vmatmul.mubr.msk.f32.vlgmr.msra.gmra.mrb[16].mxu1 %vm74_vm0, %v6405_v6 }
 0x12a   :  { %5972 = vmatpush3.bf16.msra.mxu0 %v5961_v47  ;;  %5976 = vmatpush3.bf16.msra.mxu1 %v5961_v47 }
 0x12b   :  { %5579 = vmatprep.mubr.msk.f32.mxu0 %vm74_vm0, %v6407_v7  ;;  %5586 = vmatprep.mubr.msk.f32.mxu1 %vm74_vm0, %v6409_v8 }
 0x12c   :  { %5978 = vmatprep.subr.bf16.mxu0 %v5961_v47  ;;  %5982 = vmatprep.subr.bf16.mxu1 %v5961_v47 }
 0x12d   :  { %5580 = vmatmul.mubr.msk.f32.vlgmr.msra.gmra.mrb[18].mxu0 %vm74_vm0, %v6415_v9  ;;  %5587 = vmatmul.mubr.msk.f32.vlgmr.msra.gmra.mrb[18].mxu1 %vm74_vm0, %v6417_v10 }
 0x12e   :  { %5980 = vmatpush3.bf16.msra.mxu0 %v5961_v47  ;;  %5984 = vmatpush3.bf16.msra.mxu1 %v5961_v47 }
 0x12f   :  { %5593 = vmatprep.mubr.msk.f32.mxu0 %vm74_vm0, %v6423_v11  ;;  %5600 = vmatprep.mubr.msk.f32.mxu1 %vm74_vm0, %v6425_v12 }
 0x130   :  { %5986 = vmatprep.subr.bf16.mxu0 %v5961_v47  ;;  %5990 = vmatprep.subr.bf16.mxu1 %v5961_v47 }
 0x131   :  { %5594 = vmatmul.mubr.msk.f32.vlgmr.msra.gmra.mrb[20].mxu0 %vm74_vm0, %v6431_v13  ;;  %5601 = vmatmul.mubr.msk.f32.vlgmr.msra.gmra.mrb[20].mxu1 %vm74_vm0, %v6433_v14 }
 0x132   :  { %5988 = vmatpush3.bf16.msra.mxu0 %v5961_v47  ;;  %5992 = vmatpush3.bf16.msra.mxu1 %v5961_v47 }
 0x133   :  { %5607 = vmatprep.mubr.msk.f32.mxu0 %vm74_vm0, %v6439_v15  ;;  %5614 = vmatprep.mubr.msk.f32.mxu1 %vm74_vm0, %v6441_v16 }
 0x135   :  { %5608 = vmatmul.mubr.msk.f32.vlgmr.msra.gmra.mrb[22].mxu0 %vm74_vm0, %v6447_v17  ;;  %5615 = vmatmul.mubr.msk.f32.vlgmr.msra.gmra.mrb[22].mxu1 %vm74_vm0, %v6449_v18 }
 0x136   :  { %5621 = vmatprep.mubr.msk.f32.mxu0 %vm74_vm0, %v1951_v48  ;;  %5628 = vmatprep.mubr.msk.f32.mxu1 %vm74_vm0, %v1951_v48 }
 0x1fc   :  { %v5567_v49 = vpop.f32.mrb[16].mxu0  ;;  %v5574_v50 = vpop.f32.mrb[16].mxu1 }
 0x1fd   :  { %v1416_v51 = vpop.f32.mrb[17].mxu0  ;;  %v1491_v52 = vpop.f32.mrb[17].mxu1 }
 0x1fe   :  { %v5993_v53 = vpack.c.bf16 %v5567_v49, %v1416_v51  ;;  %v5997_v54 = vpack.c.bf16 %v5574_v50, %v1491_v52 }
 0x200   :  { %v5581_v55 = vpop.f32.mrb[18].mxu0  ;;  %v5588_v56 = vpop.f32.mrb[18].mxu1  ;;  %5994 = vmatprep.subr.bf16.mxu0 %v5993_v53  ;;  %5998 = vmatprep.subr.bf16.mxu1 %v5997_v54 }
 0x201   :  { %v1566_v57 = vpop.f32.mrb[19].mxu0  ;;  %v1641_v58 = vpop.f32.mrb[19].mxu1  ;;  %5996 = vmatpush3.bf16.msra.mxu0 %v5993_v53  ;;  %6000 = vmatpush3.bf16.msra.mxu1 %v5997_v54  ;;  %v3804_v53 = vld [vmem:[#allocation7 + $0x30] sm:$0xff]  ;;  %v3805_v54 = vld [vmem:[#allocation7 + $0x38] sm:$0xff] }
 0x202   :  { %v6001_v60 = vpack.c.bf16 %v5581_v55, %v1566_v57  ;;  %v6005_v61 = vpack.c.bf16 %v5588_v56, %v1641_v58  ;;  %v6089_v57 = vpack.c.bf16 %v3805_v54, %v3804_v53  ;;  %v4407_v58 = vld [vmem:[#allocation5 + $0x30] sm:$0xff] }
 0x204   :  { %v5595_v62 = vpop.f32.mrb[20].mxu0  ;;  %v5602_v63 = vpop.f32.mrb[20].mxu1  ;;  %5622 = vmatmul.mubr.msk.f32.vlgmr.msra.gmra.mrb[8].mxu0 %vm74_vm0, %v1952_v59  ;;  %5629 = vmatmul.mubr.msk.f32.vlgmr.msra.gmra.mrb[8].mxu1 %vm74_vm0, %v1952_v59 }
 0x205   :  { %6002 = vmatprep.subr.bf16.mxu0 %v6001_v60  ;;  %6006 = vmatprep.subr.bf16.mxu1 %v6005_v61  ;;  %v1716_v0 = vpop.f32.mrb[21].mxu0  ;;  %v1791_v1 = vpop.f32.mrb[21].mxu1 }
 0x206   :  { %v6009_v3 = vpack.c.bf16 %v5595_v62, %v1716_v0  ;;  %v6013_v19 = vpack.c.bf16 %v5602_v63, %v1791_v1  ;;  %6004 = vmatpush3.bf16.msra.mxu0 %v6001_v60  ;;  %6008 = vmatpush3.bf16.msra.mxu1 %v6005_v61 }
 0x207   :  { %5635 = vmatprep.mubr.msk.f32.mxu0 %vm74_vm0, %v1951_v48  ;;  %5642 = vmatprep.mubr.msk.f32.mxu1 %vm74_vm0, %v1951_v48 }
 0x208   :  { %v5609_v20 = vpop.f32.mrb[22].mxu0  ;;  %v5616_v21 = vpop.f32.mrb[22].mxu1  ;;  %6010 = vmatprep.subr.bf16.mxu0 %v6009_v3  ;;  %6014 = vmatprep.subr.bf16.mxu1 %v6013_v19 }
 0x209   :  { %5636 = vmatmul.mubr.msk.f32.vlgmr.msra.gmra.mrb[10].mxu0 %vm74_vm0, %v1952_v59  ;;  %5643 = vmatmul.mubr.msk.f32.vlgmr.msra.gmra.mrb[10].mxu1 %vm74_vm0, %v1952_v59  ;;  %v1866_v22 = vpop.f32.mrb[23].mxu0  ;;  %v1941_v23 = vpop.f32.mrb[23].mxu1 }
 0x20a   :  { %v6017_v26 = vpack.c.bf16 %v5609_v20, %v1866_v22  ;;  %v6021_v27 = vpack.c.bf16 %v5616_v21, %v1941_v23  ;;  %6012 = vmatpush3.bf16.msra.mxu0 %v6009_v3  ;;  %6016 = vmatpush3.bf16.msra.mxu1 %v6013_v19  ;;  %v4408_v21 = vld [vmem:[#allocation5 + $0x38] sm:$0xff] }
 0x20b   :  { %5649 = vmatprep.mubr.msk.f32.mxu0 %vm74_vm0, %v1951_v48  ;;  %5656 = vmatprep.mubr.msk.f32.mxu1 %vm74_vm0, %v1951_v48 }
 0x20c   :  { %6018 = vmatprep.subr.bf16.mxu0 %v6017_v26  ;;  %6022 = vmatprep.subr.bf16.mxu1 %v6021_v27 }
 0x20d   :  { %5650 = vmatmul.mubr.msk.f32.vlgmr.msra.gmra.mrb[12].mxu0 %vm74_vm0, %v1952_v59  ;;  %5657 = vmatmul.mubr.msk.f32.vlgmr.msra.gmra.mrb[12].mxu1 %vm74_vm0, %v1952_v59 }
 0x20e   :  { %6020 = vmatpush3.bf16.msra.mxu0 %v6017_v26  ;;  %6024 = vmatpush3.bf16.msra.mxu1 %v6021_v27 }
 0x20f   :  { %5663 = vmatprep.mubr.msk.f32.mxu0 %vm74_vm0, %v1951_v48  ;;  %5670 = vmatprep.mubr.msk.f32.mxu1 %vm74_vm0, %v1951_v48 }
 0x210   :  { %6026 = vmatprep.subr.bf16.mxu0 %v6025_v28  ;;  %6030 = vmatprep.subr.bf16.mxu1 %v6025_v28 }
 0x211   :  { %5664 = vmatmul.mubr.msk.f32.vlgmr.msra.gmra.mrb[14].mxu0 %vm74_vm0, %v1952_v59  ;;  %5671 = vmatmul.mubr.msk.f32.vlgmr.msra.gmra.mrb[14].mxu1 %vm74_vm0, %v1952_v59 }
 0x212   :  { %6028 = vmatpush3.bf16.msra.mxu0 %v6025_v28  ;;  %6032 = vmatpush3.bf16.msra.mxu1 %v6025_v28 }
 0x213   :  { %5677 = vmatprep.mubr.msk.f32.mxu0 %vm74_vm0, %v6395_v2  ;;  %5684 = vmatprep.mubr.msk.f32.mxu1 %vm74_vm0, %v6399_v4 }
 0x214   :  { %6034 = vmatprep.subr.bf16.mxu0 %v6025_v28  ;;  %6038 = vmatprep.subr.bf16.mxu1 %v6025_v28 }
 0x215   :  { %5678 = vmatmul.mubr.msk.f32.vlgmr.msra.gmra.mrb[24].mxu0 %vm74_vm0, %v6403_v5  ;;  %5685 = vmatmul.mubr.msk.f32.vlgmr.msra.gmra.mrb[24].mxu1 %vm74_vm0, %v6405_v6 }
 0x216   :  { %6036 = vmatpush3.bf16.msra.mxu0 %v6025_v28  ;;  %6040 = vmatpush3.bf16.msra.mxu1 %v6025_v28 }
 0x217   :  { %5691 = vmatprep.mubr.msk.f32.mxu0 %vm74_vm0, %v6407_v7  ;;  %5698 = vmatprep.mubr.msk.f32.mxu1 %vm74_vm0, %v6409_v8 }
 0x218   :  { %6042 = vmatprep.subr.bf16.mxu0 %v6025_v28  ;;  %6046 = vmatprep.subr.bf16.mxu1 %v6025_v28 }
 0x219   :  { %5692 = vmatmul.mubr.msk.f32.vlgmr.msra.gmra.mrb[26].mxu0 %vm74_vm0, %v6415_v9  ;;  %5699 = vmatmul.mubr.msk.f32.vlgmr.msra.gmra.mrb[26].mxu1 %vm74_vm0, %v6417_v10 }
 0x21a   :  { %6044 = vmatpush3.bf16.msra.mxu0 %v6025_v28  ;;  %6048 = vmatpush3.bf16.msra.mxu1 %v6025_v28 }
 0x21b   :  { %5705 = vmatprep.mubr.msk.f32.mxu0 %vm74_vm0, %v6423_v11  ;;  %5712 = vmatprep.mubr.msk.f32.mxu1 %vm74_vm0, %v6425_v12 }
 0x21c   :  { %6050 = vmatprep.subr.bf16.mxu0 %v6025_v28  ;;  %6054 = vmatprep.subr.bf16.mxu1 %v6025_v28 }
 0x21d   :  { %5706 = vmatmul.mubr.msk.f32.vlgmr.msra.gmra.mrb[28].mxu0 %vm74_vm0, %v6431_v13  ;;  %5713 = vmatmul.mubr.msk.f32.vlgmr.msra.gmra.mrb[28].mxu1 %vm74_vm0, %v6433_v14 }
 0x21e   :  { %6052 = vmatpush3.bf16.msra.mxu0 %v6025_v28  ;;  %6056 = vmatpush3.bf16.msra.mxu1 %v6025_v28 }
 0x21f   :  { %5719 = vmatprep.mubr.msk.f32.mxu0 %vm74_vm0, %v6439_v15  ;;  %5726 = vmatprep.mubr.msk.f32.mxu1 %vm74_vm0, %v6441_v16 }
 0x221   :  { %5720 = vmatmul.mubr.msk.f32.vlgmr.msra.gmra.mrb[30].mxu0 %vm74_vm0, %v6447_v17  ;;  %5727 = vmatmul.mubr.msk.f32.vlgmr.msra.gmra.mrb[30].mxu1 %vm74_vm0, %v6449_v18 }
 0x222   :  { %5733 = vmatprep.mubr.msk.f32.mxu0 %vm74_vm0, %v3179_v29  ;;  %5740 = vmatprep.mubr.msk.f32.mxu1 %vm74_vm0, %v3179_v29 }
 0x2e8   :  { %v5679_v30 = vpop.f32.mrb[24].mxu0  ;;  %v5686_v31 = vpop.f32.mrb[24].mxu1 }
 0x2e9   :  { %v2644_v32 = vpop.f32.mrb[25].mxu0  ;;  %v2719_v33 = vpop.f32.mrb[25].mxu1 }
 0x2ea   :  { %v6057_v34 = vpack.c.bf16 %v5679_v30, %v2644_v32  ;;  %v6061_v35 = vpack.c.bf16 %v5686_v31, %v2719_v33 }
 0x2ec   :  { %v5693_v36 = vpop.f32.mrb[26].mxu0  ;;  %v5700_v37 = vpop.f32.mrb[26].mxu1  ;;  %6058 = vmatprep.subr.bf16.mxu0 %v6057_v34  ;;  %6062 = vmatprep.subr.bf16.mxu1 %v6061_v35 }
 0x2ed   :  { %v2794_v38 = vpop.f32.mrb[27].mxu0  ;;  %v2869_v39 = vpop.f32.mrb[27].mxu1  ;;  %6060 = vmatpush3.bf16.msra.mxu0 %v6057_v34  ;;  %6064 = vmatpush3.bf16.msra.mxu1 %v6061_v35 }
 0x2ee   :  { %v6065_v41 = vpack.c.bf16 %v5693_v36, %v2794_v38  ;;  %v6069_v42 = vpack.c.bf16 %v5700_v37, %v2869_v39 }
 0x2f0   :  { %v5707_v43 = vpop.f32.mrb[28].mxu0  ;;  %v5714_v44 = vpop.f32.mrb[28].mxu1  ;;  %5734 = vmatmul.mubr.msk.f32.vlgmr.msra.gmra.mrb[8].mxu0 %vm74_vm0, %v3180_v40  ;;  %5741 = vmatmul.mubr.msk.f32.vlgmr.msra.gmra.mrb[8].mxu1 %vm74_vm0, %v3180_v40 }
 0x2f1   :  { %6066 = vmatprep.subr.bf16.mxu0 %v6065_v41  ;;  %6070 = vmatprep.subr.bf16.mxu1 %v6069_v42  ;;  %v2944_v45 = vpop.f32.mrb[29].mxu0  ;;  %v3019_v46 = vpop.f32.mrb[29].mxu1 }
 0x2f2   :  { %v6073_v47 = vpack.c.bf16 %v5707_v43, %v2944_v45  ;;  %v6077_v48 = vpack.c.bf16 %v5714_v44, %v3019_v46  ;;  %6068 = vmatpush3.bf16.msra.mxu0 %v6065_v41  ;;  %6072 = vmatpush3.bf16.msra.mxu1 %v6069_v42 }
 0x2f3   :  { %5747 = vmatprep.mubr.msk.f32.mxu0 %vm74_vm0, %v3179_v29  ;;  %5754 = vmatprep.mubr.msk.f32.mxu1 %vm74_vm0, %v3179_v29 }
 0x2f4   :  { %v5721_v49 = vpop.f32.mrb[30].mxu0  ;;  %v5728_v50 = vpop.f32.mrb[30].mxu1  ;;  %6074 = vmatprep.subr.bf16.mxu0 %v6073_v47  ;;  %6078 = vmatprep.subr.bf16.mxu1 %v6077_v48 }
 0x2f5   :  { %5748 = vmatmul.mubr.msk.f32.vlgmr.msra.gmra.mrb[10].mxu0 %vm74_vm0, %v3180_v40  ;;  %5755 = vmatmul.mubr.msk.f32.vlgmr.msra.gmra.mrb[10].mxu1 %vm74_vm0, %v3180_v40  ;;  %v3094_v51 = vpop.f32.mrb[31].mxu0  ;;  %v3169_v52 = vpop.f32.mrb[31].mxu1 }
 0x2f6   :  { %v6081_v55 = vpack.c.bf16 %v5721_v49, %v3094_v51  ;;  %v6085_v56 = vpack.c.bf16 %v5728_v50, %v3169_v52  ;;  %6076 = vmatpush3.bf16.msra.mxu0 %v6073_v47  ;;  %6080 = vmatpush3.bf16.msra.mxu1 %v6077_v48 }
 0x2f7   :  { %5761 = vmatprep.mubr.msk.f32.mxu0 %vm74_vm0, %v3179_v29  ;;  %5768 = vmatprep.mubr.msk.f32.mxu1 %vm74_vm0, %v3179_v29 }
 0x2f8   :  { %6082 = vmatprep.subr.bf16.mxu0 %v6081_v55  ;;  %6086 = vmatprep.subr.bf16.mxu1 %v6085_v56 }
 0x2f9   :  { %5762 = vmatmul.mubr.msk.f32.vlgmr.msra.gmra.mrb[12].mxu0 %vm74_vm0, %v3180_v40  ;;  %5769 = vmatmul.mubr.msk.f32.vlgmr.msra.gmra.mrb[12].mxu1 %vm74_vm0, %v3180_v40 }
 0x2fa   :  { %6084 = vmatpush3.bf16.msra.mxu0 %v6081_v55  ;;  %6088 = vmatpush3.bf16.msra.mxu1 %v6085_v56 }
 0x2fb   :  { %5775 = vmatprep.mubr.msk.f32.mxu0 %vm74_vm0, %v3179_v29  ;;  %5782 = vmatprep.mubr.msk.f32.mxu1 %vm74_vm0, %v3179_v29 }
 0x2fc   :  { %6090 = vmatprep.subr.bf16.mxu0 %v6089_v57  ;;  %6094 = vmatprep.subr.bf16.mxu1 %v6089_v57 }
 0x2fd   :  { %5776 = vmatmul.mubr.msk.f32.vlgmr.msra.gmra.mrb[14].mxu0 %vm74_vm0, %v3180_v40  ;;  %5783 = vmatmul.mubr.msk.f32.vlgmr.msra.gmra.mrb[14].mxu1 %vm74_vm0, %v3180_v40 }
 0x2fe   :  { %6092 = vmatpush3.bf16.msra.mxu0 %v6089_v57  ;;  %6096 = vmatpush3.bf16.msra.mxu1 %v6089_v57 }
 0x2ff   :  { %5789 = vmatprep.mubr.msk.f32.mxu0 %vm74_vm0, %v6395_v2  ;;  %5796 = vmatprep.mubr.msk.f32.mxu1 %vm74_vm0, %v6399_v4 }
 0x300   :  { %6098 = vmatprep.subr.bf16.mxu0 %v6089_v57  ;;  %6102 = vmatprep.subr.bf16.mxu1 %v6089_v57 }
 0x301   :  { %5790 = vmatmul.mubr.msk.f32.vlgmr.msra.gmra.mrb[32].mxu0 %vm74_vm0, %v6403_v5  ;;  %5797 = vmatmul.mubr.msk.f32.vlgmr.msra.gmra.mrb[32].mxu1 %vm74_vm0, %v6405_v6 }
 0x302   :  { %6100 = vmatpush3.bf16.msra.mxu0 %v6089_v57  ;;  %6104 = vmatpush3.bf16.msra.mxu1 %v6089_v57 }
 0x303   :  { %5803 = vmatprep.mubr.msk.f32.mxu0 %vm74_vm0, %v6407_v7  ;;  %5810 = vmatprep.mubr.msk.f32.mxu1 %vm74_vm0, %v6409_v8 }
 0x304   :  { %6106 = vmatprep.subr.bf16.mxu0 %v6089_v57  ;;  %6110 = vmatprep.subr.bf16.mxu1 %v6089_v57 }
 0x305   :  { %5804 = vmatmul.mubr.msk.f32.vlgmr.msra.gmra.mrb[34].mxu0 %vm74_vm0, %v6415_v9  ;;  %5811 = vmatmul.mubr.msk.f32.vlgmr.msra.gmra.mrb[34].mxu1 %vm74_vm0, %v6417_v10 }
 0x306   :  { %6108 = vmatpush3.bf16.msra.mxu0 %v6089_v57  ;;  %6112 = vmatpush3.bf16.msra.mxu1 %v6089_v57 }
 0x307   :  { %5817 = vmatprep.mubr.msk.f32.mxu0 %vm74_vm0, %v6423_v11  ;;  %5824 = vmatprep.mubr.msk.f32.mxu1 %vm74_vm0, %v6425_v12 }
 0x308   :  { %6114 = vmatprep.subr.bf16.mxu0 %v6089_v57  ;;  %6118 = vmatprep.subr.bf16.mxu1 %v6089_v57 }
 0x309   :  { %5818 = vmatmul.mubr.msk.f32.vlgmr.msra.gmra.mrb[36].mxu0 %vm74_vm0, %v6431_v13  ;;  %5825 = vmatmul.mubr.msk.f32.vlgmr.msra.gmra.mrb[36].mxu1 %vm74_vm0, %v6433_v14 }
 0x30a   :  { %6116 = vmatpush3.bf16.msra.mxu0 %v6089_v57  ;;  %6120 = vmatpush3.bf16.msra.mxu1 %v6089_v57 }
 0x30b   :  { %5831 = vmatprep.mubr.msk.f32.mxu0 %vm74_vm0, %v6439_v15  ;;  %5838 = vmatprep.mubr.msk.f32.mxu1 %vm74_vm0, %v6441_v16 }
 0x30d   :  { %5832 = vmatmul.mubr.msk.f32.vlgmr.msra.gmra.mrb[38].mxu0 %vm74_vm0, %v6447_v17  ;;  %5839 = vmatmul.mubr.msk.f32.vlgmr.msra.gmra.mrb[38].mxu1 %vm74_vm0, %v6449_v18 }
 0x30e   :  { %5845 = vmatprep.mubr.msk.f32.mxu0 %vm74_vm0, %v4407_v58  ;;  %5852 = vmatprep.mubr.msk.f32.mxu1 %vm74_vm0, %v4407_v58 }
 0x3d4   :  { %v5791_v59 = vpop.f32.mrb[32].mxu0  ;;  %v5798_v60 = vpop.f32.mrb[32].mxu1 }
 0x3d5   :  { %v3872_v61 = vpop.f32.mrb[33].mxu0  ;;  %v3947_v62 = vpop.f32.mrb[33].mxu1 }
 0x3d6   :  { %v6121_v63 = vpack.c.bf16 %v5791_v59, %v3872_v61  ;;  %v6125_v0 = vpack.c.bf16 %v5798_v60, %v3947_v62 }
 0x3d8   :  { %v5805_v1 = vpop.f32.mrb[34].mxu0  ;;  %v5812_v3 = vpop.f32.mrb[34].mxu1  ;;  %6122 = vmatprep.subr.bf16.mxu0 %v6121_v63  ;;  %6126 = vmatprep.subr.bf16.mxu1 %v6125_v0 }
 0x3d9   :  { %v4022_v19 = vpop.f32.mrb[35].mxu0  ;;  %v4097_v20 = vpop.f32.mrb[35].mxu1  ;;  %6124 = vmatpush3.bf16.msra.mxu0 %v6121_v63  ;;  %6128 = vmatpush3.bf16.msra.mxu1 %v6125_v0 }
 0x3da   :  { %v6129_v22 = vpack.c.bf16 %v5805_v1, %v4022_v19  ;;  %v6133_v23 = vpack.c.bf16 %v5812_v3, %v4097_v20 }
 0x3dc   :  { %v5819_v24 = vpop.f32.mrb[36].mxu0  ;;  %v5826_v25 = vpop.f32.mrb[36].mxu1  ;;  %5846 = vmatmul.mubr.msk.f32.vlgmr.msra.gmra.mrb[8].mxu0 %vm74_vm0, %v4408_v21  ;;  %5853 = vmatmul.mubr.msk.f32.vlgmr.msra.gmra.mrb[8].mxu1 %vm74_vm0, %v4408_v21 }
 0x3dd   :  { %6130 = vmatprep.subr.bf16.mxu0 %v6129_v22  ;;  %6134 = vmatprep.subr.bf16.mxu1 %v6133_v23  ;;  %v4172_v26 = vpop.f32.mrb[37].mxu0  ;;  %v4247_v27 = vpop.f32.mrb[37].mxu1 }
 0x3de   :  { %v6137_v28 = vpack.c.bf16 %v5819_v24, %v4172_v26  ;;  %v6141_v29 = vpack.c.bf16 %v5826_v25, %v4247_v27  ;;  %6132 = vmatpush3.bf16.msra.mxu0 %v6129_v22  ;;  %6136 = vmatpush3.bf16.msra.mxu1 %v6133_v23 }
 0x3df   :  { %5859 = vmatprep.mubr.msk.f32.mxu0 %vm74_vm0, %v4407_v58  ;;  %5866 = vmatprep.mubr.msk.f32.mxu1 %vm74_vm0, %v4407_v58 }
 0x3e0   :  { %v5833_v30 = vpop.f32.mrb[38].mxu0  ;;  %v5840_v31 = vpop.f32.mrb[38].mxu1  ;;  %6138 = vmatprep.subr.bf16.mxu0 %v6137_v28  ;;  %6142 = vmatprep.subr.bf16.mxu1 %v6141_v29 }
 0x3e1   :  { %5860 = vmatmul.mubr.msk.f32.vlgmr.msra.gmra.mrb[10].mxu0 %vm74_vm0, %v4408_v21  ;;  %5867 = vmatmul.mubr.msk.f32.vlgmr.msra.gmra.mrb[10].mxu1 %vm74_vm0, %v4408_v21  ;;  %v4322_v32 = vpop.f32.mrb[39].mxu0  ;;  %v4397_v33 = vpop.f32.mrb[39].mxu1 }
 0x3e2   :  { %v6145_v34 = vpack.c.bf16 %v5833_v30, %v4322_v32  ;;  %v6149_v35 = vpack.c.bf16 %v5840_v31, %v4397_v33  ;;  %6140 = vmatpush3.bf16.msra.mxu0 %v6137_v28  ;;  %6144 = vmatpush3.bf16.msra.mxu1 %v6141_v29 }
 0x3e3   :  { %5873 = vmatprep.mubr.msk.f32.mxu0 %vm74_vm0, %v4407_v58  ;;  %5880 = vmatprep.mubr.msk.f32.mxu1 %vm74_vm0, %v4407_v58 }
 0x3e4   :  { %6146 = vmatprep.subr.bf16.mxu0 %v6145_v34  ;;  %6150 = vmatprep.subr.bf16.mxu1 %v6149_v35 }
 0x3e5   :  { %5874 = vmatmul.mubr.msk.f32.vlgmr.msra.gmra.mrb[12].mxu0 %vm74_vm0, %v4408_v21  ;;  %5881 = vmatmul.mubr.msk.f32.vlgmr.msra.gmra.mrb[12].mxu1 %vm74_vm0, %v4408_v21 }
 0x3e6   :  { %6148 = vmatpush3.bf16.msra.mxu0 %v6145_v34  ;;  %6152 = vmatpush3.bf16.msra.mxu1 %v6149_v35 }
 0x3e7   :  { %5887 = vmatprep.mubr.msk.f32.mxu0 %vm74_vm0, %v4407_v58  ;;  %5894 = vmatprep.mubr.msk.f32.mxu1 %vm74_vm0, %v4407_v58 }
 0x3e9   :  { %5888 = vmatmul.mubr.msk.f32.vlgmr.msra.gmra.mrb[14].mxu0 %vm74_vm0, %v4408_v21  ;;  %5895 = vmatmul.mubr.msk.f32.vlgmr.msra.gmra.mrb[14].mxu1 %vm74_vm0, %v4408_v21 }
 0x4af   :  { %v5847_v36 = vpop.f32.mrb[8].mxu0  ;;  %v5854_v37 = vpop.f32.mrb[8].mxu1 }
 0x4b0   :  { %v6153_v38 = vadd.f32 %v5847_v36, %v6403_v5  ;;  %v6155_v39 = vadd.f32 %v5854_v37, %v6405_v6  ;;  %v4481_v40 = vpop.f32.mrb[9].mxu0  ;;  %v4556_v41 = vpop.f32.mrb[9].mxu1 }
 0x4b1   :  { %v6154_v42 = vadd.f32 %v4481_v40, %v6395_v2  ;;  %v6156_v43 = vadd.f32 %v4556_v41, %v6399_v4 }
 0x4b2   :  { %5032 = vst.msk [vmem:[#allocation8 + $0x8] sm:$0xff] %vm74_vm0, %v6153_v38  ;;  %5034 = vst.msk [vmem:[#allocation8 + $0x18] sm:$0xff] %vm74_vm0, %v6155_v39 }
 0x4b3   :  { %5031 = vst.msk [vmem:[#allocation8] sm:$0xff] %vm74_vm0, %v6154_v42  ;;  %5033 = vst.msk [vmem:[#allocation8 + $0x10] sm:$0xff] %vm74_vm0, %v6156_v43 }
 0x4b4   :  { %v5861_v44 = vpop.f32.mrb[10].mxu0  ;;  %v5868_v45 = vpop.f32.mrb[10].mxu1 }
 0x4b5   :  { %v6157_v5 = vadd.f32 %v5861_v44, %v6415_v9  ;;  %v6159_v6 = vadd.f32 %v5868_v45, %v6417_v10  ;;  %v4631_v46 = vpop.f32.mrb[11].mxu0  ;;  %v4706_v47 = vpop.f32.mrb[11].mxu1 }
 0x4b6   :  { %v6158_v2 = vadd.f32 %v4631_v46, %v6407_v7  ;;  %v6160_v4 = vadd.f32 %v4706_v47, %v6409_v8 }
 0x4b7   :  { %5036 = vst.msk [vmem:[#allocation8 + $0x28] sm:$0xff] %vm74_vm0, %v6157_v5  ;;  %5038 = vst.msk [vmem:[#allocation8 + $0x38] sm:$0xff] %vm74_vm0, %v6159_v6 }
 0x4b8   :  { %5035 = vst.msk [vmem:[#allocation8 + $0x20] sm:$0xff] %vm74_vm0, %v6158_v2  ;;  %5037 = vst.msk [vmem:[#allocation8 + $0x30] sm:$0xff] %vm74_vm0, %v6160_v4  ;;  %v5875_v48 = vpop.f32.mrb[12].mxu0  ;;  %v5882_v49 = vpop.f32.mrb[12].mxu1 }
 0x4b9   :  { %v6161_v9 = vadd.f32 %v5875_v48, %v6431_v13  ;;  %v6163_v10 = vadd.f32 %v5882_v49, %v6433_v14  ;;  %v4781_v50 = vpop.f32.mrb[13].mxu0  ;;  %v4856_v51 = vpop.f32.mrb[13].mxu1 }
 0x4ba   :  { %v6162_v7 = vadd.f32 %v4781_v50, %v6423_v11  ;;  %v6164_v8 = vadd.f32 %v4856_v51, %v6425_v12 }
 0x4bb   :  { %5040 = vst.msk [vmem:[#allocation8 + $0x48] sm:$0xff] %vm74_vm0, %v6161_v9  ;;  %5042 = vst.msk [vmem:[#allocation8 + $0x58] sm:$0xff] %vm74_vm0, %v6163_v10 }
 0x4bc   :  { %5039 = vst.msk [vmem:[#allocation8 + $0x40] sm:$0xff] %vm74_vm0, %v6162_v7  ;;  %5041 = vst.msk [vmem:[#allocation8 + $0x50] sm:$0xff] %vm74_vm0, %v6164_v8  ;;  %v5889_v52 = vpop.f32.mrb[14].mxu0  ;;  %v5896_v13 = vpop.f32.mrb[14].mxu1 }
 0x4bd   :  { %v6165_v14 = vadd.f32 %v5889_v52, %v6447_v17  ;;  %v6167_v53 = vadd.f32 %v5896_v13, %v6449_v18  ;;  %v4931_v54 = vpop.f32.mrb[15].mxu0  ;;  %v5006_v11 = vpop.f32.mrb[15].mxu1 }
 0x4be   :  { %v6166_v12 = vadd.f32 %v4931_v54, %v6439_v15  ;;  %v6168_v55 = vadd.f32 %v5006_v11, %v6441_v16 }
 0x4bf   :  { %5044 = vst.msk [vmem:[#allocation8 + $0x68] sm:$0xff] %vm74_vm0, %v6165_v14  ;;  %5046 = vst.msk [vmem:[#allocation8 + $0x78] sm:$0xff] %vm74_vm0, %v6167_v53 }
 0x4c0   :  { %5043 = vst.msk [vmem:[#allocation8 + $0x60] sm:$0xff] %vm74_vm0, %v6166_v12  ;;  %5045 = vst.msk [vmem:[#allocation8 + $0x70] sm:$0xff] %vm74_vm0, %v6168_v55 }
 0x4c1   :  { %6300 = shalt.err (!%p6297_p0)
}
 0x4c2   :  { %s6301_s27 = scalar_lea.hbm %s6669_s3, 2048 }
 0x4c3   :  { %p6302_p1 = scmp.ne.s32.totalorder %s6669_s3, %s6301_s27  ;;  %p6305_p2 = scmp.lt.u32.totalorder %s6301_s27, %s6669_s3 }
 0x4c5   :  { %p6307_p3 = pnand %p6305_p2, %p6302_p1 }
 0x4c7   :  { %6310 = shalt.err (!%p6307_p3)
}
 0x4c8   :  { %5058 = dma.vmem_to_hbm [thread:$0]  %s5053_s21, 2048, %s6669_s3, [#allocation4], %s6319_s24, %s6319_s24, %s6320_s25  }
 0x4c9   :  { %6315 = dma.done.wait [#allocation4], 2048  }
 0x4ca   :  { %6316 = vsyncadd [#allocation4], 4294965248 }
 0x4cb   :  { %5062 = vsyncpa [#allocation3], 1 }
 0x4cc   :  { %5063 = vsyncpa [#allocation6], 1 }
 0x4cd   :  { %5064 = vsyncpa [#allocation4], 1 }

</bundles_post_ra>
